<compile_context>
chip_gen: v7x
topology: tpu7x:2x2x1
jax: 0.10.0
libtpu: 0.0.40
codegen_flags: <defaults>
</compile_context>

<pallas_src>
import jax
import jax.numpy as jnp
import numpy as np
from jax.experimental import pallas as pl
from jax.experimental.pallas import tpu as pltpu

LANES = 128  # lane-dense output width


def _learn_pose_kernel(ids_ref, r_ref, t_ref, out_ref):
    b = pl.program_id(0)
    pid = ids_ref[b]                       # scalar pose id from SMEM prefetch

    theta = r_ref[pl.ds(pid, 1), :]        # (1, 3) euler angles (a, b, c)
    trow = t_ref[pl.ds(pid, 1), :]         # (1, 3) translation

    ct = jnp.cos(theta)                    # EUP
    st = jnp.sin(theta)
    ca, cb, cc = ct[0, 0], ct[0, 1], ct[0, 2]
    sa, sb, sc_ = st[0, 0], st[0, 1], st[0, 2]

    # Closed form of Rz @ (Ry @ Rx) -- 9 scalar expressions, no MXU.
    r00 = cc * cb
    r01 = cc * sb * sa - sc_ * ca
    r02 = cc * sb * ca + sc_ * sa
    r10 = sc_ * cb
    r11 = sc_ * sb * sa + cc * ca
    r12 = sc_ * sb * ca - cc * sa
    r20 = -sb
    r21 = cb * sa
    r22 = cb * ca

    tx, ty, tz = trow[0, 0], trow[0, 1], trow[0, 2]

    # Single (8, 128) lane-dense output tile: R in rows 0-2, t in row 3.
    row = jax.lax.broadcasted_iota(jnp.int32, (8, LANES), 0)
    col = jax.lax.broadcasted_iota(jnp.int32, (8, LANES), 1)
    flat = row * LANES + col               # hoisted: one iota pair, one vreg set

    out = jnp.zeros((8, LANES), jnp.float32)
    entries = ((0, 0, r00), (0, 1, r01), (0, 2, r02),
               (1, 0, r10), (1, 1, r11), (1, 2, r12),
               (2, 0, r20), (2, 1, r21), (2, 2, r22),
               (3, 0, tx), (3, 1, ty), (3, 2, tz))
    for i, j, v in entries:
        out = jnp.where(flat == (i * LANES + j), v, out)

    out_ref[...] = out                     # unmasked full-tile store


def learn_pose_forward_batched(r_param, t_param, pose_ids):
    """Batched LearnPose.forward: returns (R (B,3,3), t (B,3))."""
    num_cams = r_param.shape[0]
    pose_ids = jnp.asarray(pose_ids, dtype=jnp.int32).reshape(-1)
    B = pose_ids.shape[0]

    out = pl.pallas_call(
        _learn_pose_kernel,
        out_shape=jax.ShapeDtypeStruct((B, 8, LANES), jnp.float32),
        grid_spec=pltpu.PrefetchScalarGridSpec(
            num_scalar_prefetch=1,
            grid=(B,),
            in_specs=[
                # Tiny parameter tables stay resident (constant block index
                # => DMA'd once across the whole grid).
                pl.BlockSpec((num_cams, 3), lambda b, ids: (0, 0)),
                pl.BlockSpec((num_cams, 3), lambda b, ids: (0, 0)),
            ],
            out_specs=pl.BlockSpec((None, 8, LANES),
                                   lambda b, ids: (b, 0, 0)),
        ),
        compiler_params=pltpu.CompilerParams(
            dimension_semantics=("parallel",)),
    )(pose_ids, r_param, t_param)

    R = out[:, :3, :3]
    t = out[:, 3, :3]
    return R, t


def learn_pose_forward(r_param, t_param, pose_id):
    """Single-pose LearnPose.forward(pose_id) -> (R (3,3), t (3,))."""
    R, t = learn_pose_forward_batched(r_param, t_param,
                                      jnp.asarray([pose_id], jnp.int32))
    return R[0], t[0]


def _ref_euler_to_rot(theta):
    a, b, c = float(theta[0]), float(theta[1]), float(theta[2])
    x = np.array([[1, 0, 0],
                  [0, np.cos(a), -np.sin(a)],
                  [0, np.sin(a), np.cos(a)]], dtype=np.float64)
    y = np.array([[np.cos(b), 0, np.sin(b)],
                  [0, 1, 0],
                  [-np.sin(b), 0, np.cos(b)]], dtype=np.float64)
    z = np.array([[np.cos(c), -np.sin(c), 0],
                  [np.sin(c), np.cos(c), 0],
                  [0, 0, 1]], dtype=np.float64)
    return z @ (y @ x)


if __name__ == "__main__":
    num_cams = 5
    key = jax.random.PRNGKey(0)
    k_r, k_t = jax.random.split(key)
    # Deterministic synthetic "store_dict" parameters (rot_pred / trans_pred).
    r_param = jax.random.uniform(k_r, (num_cams, 3), jnp.float32,
                                 minval=-np.pi, maxval=np.pi)
    t_param = jax.random.normal(k_t, (num_cams, 3), jnp.float32)

    # Batched invocation (amortizes launch / per-step overhead).
    pose_ids = np.array([2, 0, 4, 1], dtype=np.int32)
    R_b, t_b = learn_pose_forward_batched(r_param, t_param, pose_ids)
    R_b = jax.block_until_ready(R_b)
    t_b = jax.block_until_ready(t_b)

    r_np = np.asarray(r_param)
    t_np = np.asarray(t_param)
    assert R_b.shape == (len(pose_ids), 3, 3) and t_b.shape == (len(pose_ids), 3)
    for n, pid in enumerate(pose_ids):
        np.testing.assert_allclose(np.asarray(R_b[n]),
                                   _ref_euler_to_rot(r_np[pid]),
                                   atol=1e-5, rtol=1e-5)
        np.testing.assert_allclose(np.asarray(t_b[n]), t_np[pid],
                                   atol=1e-6, rtol=1e-6)

    # Single-pose API (matches the PyTorch module's forward signature).
    pose_id = 2
    R, t = learn_pose_forward(r_param, t_param, pose_id)
    R = jax.block_until_ready(R)
    t = jax.block_until_ready(t)
    assert R.shape == (3, 3) and t.shape == (3,)
    np.testing.assert_allclose(np.asarray(R), _ref_euler_to_rot(r_np[pose_id]),
                               atol=1e-5, rtol=1e-5)
    np.testing.assert_allclose(np.asarray(t), t_np[pose_id],
                               atol=1e-6, rtol=1e-6)

    print("KERNEL_OK")
</pallas_src>

<mosaic_0001>
module attributes {stable_mosaic.version = 11 : i64} {
  func.func @_learn_pose_kernel(%arg0: i32, %arg1: memref<4xi32, #tpu.memory_space<smem>>, %arg2: memref<5x3xf32, #tpu.memory_space<vmem>>, %arg3: memref<5x3xf32, #tpu.memory_space<vmem>>, %arg4: memref<1x8x128xf32, #tpu.memory_space<vmem>>) attributes {dimension_semantics = [#tpu.dimension_semantics<parallel>], iteration_bounds = array<i64: 4>, scalar_prefetch = 1 : i64, scratch_operands = 0 : i64, tpu.core_type = #tpu.core_type<tc>, window_params = [{pipeline_mode = #tpu.pipeline_mode<synchronous>, transform_indices = @transform_0, window_bounds = array<i64: 5, 3>}, {pipeline_mode = #tpu.pipeline_mode<synchronous>, transform_indices = @transform_1, window_bounds = array<i64: 5, 3>}, {transform_indices = @transform_2, window_bounds = array<i64: 1, 8, 128>}]} {
    %0 = arith.index_cast %arg0 : i32 to index
    %1 = memref.load %arg1[%0] : memref<4xi32, #tpu.memory_space<smem>>
    %2 = arith.index_cast %1 : i32 to index
    %c0 = arith.constant 0 : index
    %3 = vector.load %arg2[%2, %c0] : memref<5x3xf32, #tpu.memory_space<vmem>>, vector<1x3xf32>
    %4 = arith.index_cast %1 : i32 to index
    %c0_0 = arith.constant 0 : index
    %5 = vector.load %arg3[%4, %c0_0] : memref<5x3xf32, #tpu.memory_space<vmem>>, vector<1x3xf32>
    %6 = math.cos %3 : vector<1x3xf32>
    %7 = math.sin %3 : vector<1x3xf32>
    %8 = vector.extract_strided_slice %6 {offsets = [0, 0], sizes = [1, 1], strides = [1, 1]} : vector<1x3xf32> to vector<1x1xf32>
    %9 = vector.extract %8[0, 0] : f32 from vector<1x1xf32>
    %10 = vector.extract_strided_slice %6 {offsets = [0, 1], sizes = [1, 1], strides = [1, 1]} : vector<1x3xf32> to vector<1x1xf32>
    %11 = vector.extract %10[0, 0] : f32 from vector<1x1xf32>
    %12 = vector.extract_strided_slice %6 {offsets = [0, 2], sizes = [1, 1], strides = [1, 1]} : vector<1x3xf32> to vector<1x1xf32>
    %13 = vector.extract %12[0, 0] : f32 from vector<1x1xf32>
    %14 = vector.extract_strided_slice %7 {offsets = [0, 0], sizes = [1, 1], strides = [1, 1]} : vector<1x3xf32> to vector<1x1xf32>
    %15 = vector.extract %14[0, 0] : f32 from vector<1x1xf32>
    %16 = vector.extract_strided_slice %7 {offsets = [0, 1], sizes = [1, 1], strides = [1, 1]} : vector<1x3xf32> to vector<1x1xf32>
    %17 = vector.extract %16[0, 0] : f32 from vector<1x1xf32>
    %18 = vector.extract_strided_slice %7 {offsets = [0, 2], sizes = [1, 1], strides = [1, 1]} : vector<1x3xf32> to vector<1x1xf32>
    %19 = vector.extract %18[0, 0] : f32 from vector<1x1xf32>
    %20 = arith.mulf %13, %11 : f32
    %21 = arith.mulf %13, %17 : f32
    %22 = arith.mulf %21, %15 : f32
    %23 = arith.mulf %19, %9 : f32
    %24 = arith.subf %22, %23 : f32
    %25 = arith.mulf %13, %17 : f32
    %26 = arith.mulf %25, %9 : f32
    %27 = arith.mulf %19, %15 : f32
    %28 = arith.addf %26, %27 : f32
    %29 = arith.mulf %19, %11 : f32
    %30 = arith.mulf %19, %17 : f32
    %31 = arith.mulf %30, %15 : f32
    %32 = arith.mulf %13, %9 : f32
    %33 = arith.addf %31, %32 : f32
    %34 = arith.mulf %19, %17 : f32
    %35 = arith.mulf %34, %9 : f32
    %36 = arith.mulf %13, %15 : f32
    %37 = arith.subf %35, %36 : f32
    %cst = arith.constant 0.000000e+00 : f32
    %38 = arith.subf %cst, %17 : f32
    %39 = arith.mulf %11, %15 : f32
    %40 = arith.mulf %11, %9 : f32
    %41 = vector.extract_strided_slice %5 {offsets = [0, 0], sizes = [1, 1], strides = [1, 1]} : vector<1x3xf32> to vector<1x1xf32>
    %42 = vector.extract %41[0, 0] : f32 from vector<1x1xf32>
    %43 = vector.extract_strided_slice %5 {offsets = [0, 1], sizes = [1, 1], strides = [1, 1]} : vector<1x3xf32> to vector<1x1xf32>
    %44 = vector.extract %43[0, 0] : f32 from vector<1x1xf32>
    %45 = vector.extract_strided_slice %5 {offsets = [0, 2], sizes = [1, 1], strides = [1, 1]} : vector<1x3xf32> to vector<1x1xf32>
    %46 = vector.extract %45[0, 0] : f32 from vector<1x1xf32>
    %47 = tpu.iota {dimensions = array<i32: 0>} : vector<8x128xi32>
    %48 = tpu.iota {dimensions = array<i32: 1>} : vector<8x128xi32>
    %c128_i32 = arith.constant 128 : i32
    %49 = vector.broadcast %c128_i32 : i32 to vector<8x128xi32>
    %50 = arith.muli %47, %49 : vector<8x128xi32>
    %51 = arith.addi %50, %48 : vector<8x128xi32>
    %cst_1 = arith.constant 0.000000e+00 : f32
    %52 = vector.broadcast %cst_1 : f32 to vector<8x128xf32>
    %c0_i32 = arith.constant 0 : i32
    %53 = vector.broadcast %c0_i32 : i32 to vector<8x128xi32>
    %54 = arith.cmpi eq, %51, %53 : vector<8x128xi32>
    %55 = vector.broadcast %20 : f32 to vector<8x128xf32>
    %56 = arith.select %54, %55, %52 : vector<8x128xi1>, vector<8x128xf32>
    %c1_i32 = arith.constant 1 : i32
    %57 = vector.broadcast %c1_i32 : i32 to vector<8x128xi32>
    %58 = arith.cmpi eq, %51, %57 : vector<8x128xi32>
    %59 = vector.broadcast %24 : f32 to vector<8x128xf32>
    %60 = arith.select %58, %59, %56 : vector<8x128xi1>, vector<8x128xf32>
    %c2_i32 = arith.constant 2 : i32
    %61 = vector.broadcast %c2_i32 : i32 to vector<8x128xi32>
    %62 = arith.cmpi eq, %51, %61 : vector<8x128xi32>
    %63 = vector.broadcast %28 : f32 to vector<8x128xf32>
    %64 = arith.select %62, %63, %60 : vector<8x128xi1>, vector<8x128xf32>
    %c128_i32_2 = arith.constant 128 : i32
    %65 = vector.broadcast %c128_i32_2 : i32 to vector<8x128xi32>
    %66 = arith.cmpi eq, %51, %65 : vector<8x128xi32>
    %67 = vector.broadcast %29 : f32 to vector<8x128xf32>
    %68 = arith.select %66, %67, %64 : vector<8x128xi1>, vector<8x128xf32>
    %c129_i32 = arith.constant 129 : i32
    %69 = vector.broadcast %c129_i32 : i32 to vector<8x128xi32>
    %70 = arith.cmpi eq, %51, %69 : vector<8x128xi32>
    %71 = vector.broadcast %33 : f32 to vector<8x128xf32>
    %72 = arith.select %70, %71, %68 : vector<8x128xi1>, vector<8x128xf32>
    %c130_i32 = arith.constant 130 : i32
    %73 = vector.broadcast %c130_i32 : i32 to vector<8x128xi32>
    %74 = arith.cmpi eq, %51, %73 : vector<8x128xi32>
    %75 = vector.broadcast %37 : f32 to vector<8x128xf32>
    %76 = arith.select %74, %75, %72 : vector<8x128xi1>, vector<8x128xf32>
    %c256_i32 = arith.constant 256 : i32
    %77 = vector.broadcast %c256_i32 : i32 to vector<8x128xi32>
    %78 = arith.cmpi eq, %51, %77 : vector<8x128xi32>
    %79 = vector.broadcast %38 : f32 to vector<8x128xf32>
    %80 = arith.select %78, %79, %76 : vector<8x128xi1>, vector<8x128xf32>
    %c257_i32 = arith.constant 257 : i32
    %81 = vector.broadcast %c257_i32 : i32 to vector<8x128xi32>
    %82 = arith.cmpi eq, %51, %81 : vector<8x128xi32>
    %83 = vector.broadcast %39 : f32 to vector<8x128xf32>
    %84 = arith.select %82, %83, %80 : vector<8x128xi1>, vector<8x128xf32>
    %c258_i32 = arith.constant 258 : i32
    %85 = vector.broadcast %c258_i32 : i32 to vector<8x128xi32>
    %86 = arith.cmpi eq, %51, %85 : vector<8x128xi32>
    %87 = vector.broadcast %40 : f32 to vector<8x128xf32>
    %88 = arith.select %86, %87, %84 : vector<8x128xi1>, vector<8x128xf32>
    %c384_i32 = arith.constant 384 : i32
    %89 = vector.broadcast %c384_i32 : i32 to vector<8x128xi32>
    %90 = arith.cmpi eq, %51, %89 : vector<8x128xi32>
    %91 = vector.broadcast %42 : f32 to vector<8x128xf32>
    %92 = arith.select %90, %91, %88 : vector<8x128xi1>, vector<8x128xf32>
    %c385_i32 = arith.constant 385 : i32
    %93 = vector.broadcast %c385_i32 : i32 to vector<8x128xi32>
    %94 = arith.cmpi eq, %51, %93 : vector<8x128xi32>
    %95 = vector.broadcast %44 : f32 to vector<8x128xf32>
    %96 = arith.select %94, %95, %92 : vector<8x128xi1>, vector<8x128xf32>
    %c386_i32 = arith.constant 386 : i32
    %97 = vector.broadcast %c386_i32 : i32 to vector<8x128xi32>
    %98 = arith.cmpi eq, %51, %97 : vector<8x128xi32>
    %99 = vector.broadcast %46 : f32 to vector<8x128xf32>
    %100 = arith.select %98, %99, %96 : vector<8x128xi1>, vector<8x128xf32>
    %c0_3 = arith.constant 0 : index
    %c0_4 = arith.constant 0 : index
    %c0_5 = arith.constant 0 : index
    %101 = vector.load %arg4[%c0_3, %c0_4, %c0_5] : memref<1x8x128xf32, #tpu.memory_space<vmem>>, vector<1x8x128xf32>
    %102 = vector.shape_cast %101 : vector<1x8x128xf32> to vector<8x128xf32>
    %103 = vector.shape_cast %100 : vector<8x128xf32> to vector<1x8x128xf32>
    tpu.vector_store %arg4[%c0_3, %c0_4, %c0_5], %103 {strides = array<i32>} : memref<1x8x128xf32, #tpu.memory_space<vmem>>, vector<1x8x128xf32>,
    return
  }
  func.func @transform_0(%arg0: i32, %arg1: memref<4xi32, #tpu.memory_space<smem>>) -> (i32, i32) {
    %c0_i32 = arith.constant 0 : i32
    %c0_i32_0 = arith.constant 0 : i32
    %c0_i32_1 = arith.constant 0 : i32
    return %c0_i32, %c0_i32_0 : i32, i32
  }
  func.func @transform_1(%arg0: i32, %arg1: memref<4xi32, #tpu.memory_space<smem>>) -> (i32, i32) {
    %c0_i32 = arith.constant 0 : i32
    %c0_i32_0 = arith.constant 0 : i32
    %c0_i32_1 = arith.constant 0 : i32
    return %c0_i32, %c0_i32_0 : i32, i32
  }
  func.func @transform_2(%arg0: i32, %arg1: memref<4xi32, #tpu.memory_space<smem>>) -> (i32, i32, i32) {
    %c0_i32 = arith.constant 0 : i32
    %c0_i32_0 = arith.constant 0 : i32
    %c0_i32_1 = arith.constant 0 : i32
    return %arg0, %c0_i32, %c0_i32_0 : i32, i32, i32
  }
}

</mosaic_0001>

<bundles_post_ra>
// kernel: tpu_custom_call.1
= control target key start
LH: loop header
LB: loop body
LE: loop exit
PB: predicated region body
PF: predicated region fallthrough
CT: control target
= control target key end

     0   :  { %s870_s0 = inlined_call_operand.vmem [shape: s32[4], index: 0, kind: input, shape index: {}]   ;;  %s871_s1 = inlined_call_operand.vmem [shape: f32[5,3], index: 1, kind: input, shape index: {}]   ;;  %s872_s2 = inlined_call_operand.vmem [shape: f32[5,3], index: 2, kind: input, shape index: {}]   ;;  %s873_s3 = inlined_call_operand.hbm [shape: f32[4,8,128], index: 3, kind: output, shape index: {}]  }
   0x1   :  { %874 = sst [smem:[#allocation8_spill]] %s871_s1  ;;  %s8_s14 = sshll.u32 %s870_s0, 4  ;;  %s9_s14 = int_to_ptr.vmem [resolvable:$true] %s8_s14 }
   0x2   :  { %s577_s15 = scalar_lea.vmem %s9_s14, 16  ;;  %p582_p1 = scmp.lt.s32.totalorder %s9_s14, %s9_s14 }
   0x3   :  { %p578_p0 = scmp.ne.s32.totalorder %s9_s14, %s577_s15  ;;  %p583_p2 = scmp.lt.s32.totalorder %s577_s15, %s577_s15 }
   0x5   :  { %p584_p3 = por %p583_p2, %p582_p1 }
   0x7   :  { %p585_p4 = pnand %p584_p3, %p578_p0 }
   0x9   :  { %588 = shalt.err (!%p585_p4)  }
   0xa   :  { %s655_s16 = smov [#allocation3]  }
   0xb   :  { %11 = dma.vmem_to_smem %s9_s14, 16, %s655_s16, [#allocation2] }
   0xc   :  { %633 = dma.done.wait [#allocation2], 16 }
   0xd   :  { %634 = vsyncadd [#allocation2], 4294967280 }
   0xe   :  { %13 = sfence }
   0xf   :  { %14 = vsyncpa [#allocation5], 0 }
  0x10   :  { %16 = vsyncpa [#allocation5 + $0x1], 0  ;;  %s688_s17 = smov 0   ;;  %s690_s18 = smov 0  }
  0x11   :  { %s692_s0 = smov 0   ;;  %s694_s19 = smov 0  }
  0x12 LB: > { %s709_s20 = sadd.s32 4294967295, %s653_s19   ;;  %s487_s21 = sadd.s32 4294967294, %s653_s19   ;;  %s653_s19 = sphi %s694_s19, %s881_s19   ;;  %s649_s0 = sphi %s692_s0, %s880_s0   ;;  %s645_s18 = sphi %s690_s18, %s879_s18   ;;  %s641_s17 = sphi %s688_s17, %s878_s17  }
  0x13   : > { %s713_s22 = sadd.s32 1, %s653_s19   ;;  %s71_s23 = sadd.s32 1, %s649_s0 }
  0x14   : > { %s68_s24 = ssub.s32 %s653_s19, %s713_s22  ;;  %p81_p5 = scmp.ne.s32.totalorder %s649_s0, %s645_s18 }
  0x15   : > { %p69_p6 = scmp.eq.s32.totalorder %s68_s24, 0  ;;  %p82_p7 = scmp.eq.s32.totalorder %s709_s20, 3 }
  0x16   : > { %p87_p8 = scmp.ne.s32.totalorder %s645_s18, %s641_s17  ;;  %p88_p9 = scmp.eq.s32.totalorder %s487_s21, 3 }
  0x17   : > { %s724_s25 = scalar_select %p69_p6, %s649_s0, %s71_s23  }
  0x18   : > { %p726_p10 = por %p82_p7, %p81_p5  ;;  %p730_p11 = por %p88_p9, %p87_p8 }
  0x19   : > { %p489_p12 = scmp.ge.s32.totalorder %s653_s19, 1  ;;  %p112_p13 = scmp.lt.s32.totalorder %s653_s19, 5 }
  0x1b   : > { %p113_p0 = pnand %p489_p12, %p112_p13 }
  0x1c   : > { %s737_s28 = sld [smem:[#allocation3 + %s709_s20]] (!%p113_p0)  ;;  %v656_v12 = vmov (!%p113_p0), 683565275   ;;  %v657_v14 = vmov (!%p113_p0), 2475754826   ;;  %s662_s5 = smov (!%p113_p0), 127  }
  0x1d   : > { %116 = sbr.rel (%p113_p0) target bundleno = 324 (0x144), region = 28  ;;  %s877_s1 = sld [smem:[#allocation8_spill]] (!%p113_p0)  ;;  %v658_v16 = vmov (!%p113_p0), 2131351028   ;;  %v659_v18 = vmov (!%p113_p0), 2102212464  }
  0x1e   : > { %v660_v20 = vmov (!%p113_p0), 920167782   ;;  %v661_v27 = vmov (!%p113_p0), 1326507024   ;;  %s663_s9 = smov (!%p113_p0), 126   ;;  %s126_s6 = sand.u32 (!%p113_p0), 1, %s645_s18  }
  0x22   : > { %s132_s8 = scalar_lea.vmem (!%p113_p0), %s872_s2, %s737_s28 }
  0x23   : > { %s130_s4 = scalar_lea.vmem (!%p113_p0), %s877_s1, %s737_s28 }
  0x24   : > { %v743_v0 = vld [vmem:[%s130_s4] sm:$0x1] }
  0x25   : > { %v137_v1 = vand.u32 2139095040, %v743_v0  ;;  %v134_v3 = vand.u32 2147483647, %v743_v0  ;;  %vm136_vm7 = vcmp.lt.s32.totalorder %v743_v0, 0  ;;  %vm226_vm15 = vweird.f32 %v743_v0 }
  0x27   : > { %v138_v2 = vshrl.u32 %v137_v1, 23  ;;  %v141_v6 = vand.u32 8388607, %v134_v3  ;;  %vm135_vm8 = vcmp.le.f32.partialorder %v134_v3, 0.7853982 }
  0x29   : > { %v491_v4 = vadd.s32 4294967169, %v138_v2  ;;  %v142_v9 = vor.u32 8388608, %v141_v6 }
  0x2b   : > { %v144_v5 = vadd.s32 1, %v491_v4  ;;  %v182_v29 = vshll.u32 %v142_v9, 8 }
  0x2d   : > { %vm145_vm0 = vcmp.gt.s32.totalorder %v144_v5, 0 }
  0x2e   : > { %v146_v7 = vsel %vm145_vm0, %v144_v5, 0 }
  0x2f   : > { %v148_v8 = vand.u32 31, %v146_v7  ;;  %v147_v10 = vshrl.u32 %v146_v7, 5 }
  0x31   : > { %v149_v11 = vsub.s32 32, %v148_v8  ;;  %v151_v13 = vshll.u32 %v656_v12, %v148_v8  ;;  %v154_v15 = vshll.u32 %v657_v14, %v148_v8  ;;  %v157_v17 = vshll.u32 %v658_v16, %v148_v8 }
  0x32   : > { %v160_v19 = vshll.u32 %v659_v18, %v148_v8  ;;  %v163_v21 = vshll.u32 %v660_v20, %v148_v8  ;;  %vm166_vm1 = vcmp.lt.s32.totalorder %v147_v10, 1  ;;  %vm169_vm2 = vcmp.lt.s32.totalorder %v147_v10, 4 }
  0x33   : > { %v150_v22 = vshrl.u32 %v656_v12, %v149_v11  ;;  %v152_v23 = vshrl.u32 %v657_v14, %v149_v11  ;;  %v155_v24 = vshrl.u32 %v658_v16, %v149_v11  ;;  %v158_v25 = vshrl.u32 %v659_v18, %v149_v11 }
  0x34   : > { %v161_v26 = vshrl.u32 %v660_v20, %v149_v11  ;;  %v164_v28 = vshrl.u32 %v661_v27, %v149_v11  ;;  %vm167_vm3 = vcmp.lt.s32.totalorder %v147_v10, 2  ;;  %vm168_vm4 = vcmp.lt.s32.totalorder %v147_v10, 3 }
  0x35   : > { %v153_v30 = vor.u32 %v152_v23, %v151_v13  ;;  %v156_v31 = vor.u32 %v155_v24, %v154_v15  ;;  %v159_v32 = vor.u32 %v158_v25, %v157_v17 }
  0x36   : > { %v162_v33 = vor.u32 %v161_v26, %v160_v19  ;;  %v165_v34 = vor.u32 %v164_v28, %v163_v21 }
  0x37   : > { %v170_v35 = vsel %vm166_vm1, %v150_v22, %v153_v30  ;;  %v171_v36 = vsel %vm169_vm2, %v159_v32, 2102212464  ;;  %v174_v37 = vsel %vm166_vm1, %v153_v30, %v156_v31  ;;  %v178_v38 = vsel %vm166_vm1, %v156_v31, %v159_v32 }
  0x38   : > { %v172_v39 = vsel %vm168_vm4, %v156_v31, %v171_v36  ;;  %v175_v40 = vsel %vm169_vm2, %v162_v33, 920167782  ;;  %v179_v41 = vsel %vm169_vm2, %v165_v34, 1326507024 }
  0x39   : > { %v176_v42 = vsel %vm168_vm4, %v159_v32, %v175_v40  ;;  %v180_v43 = vsel %vm168_vm4, %v162_v33, %v179_v41  ;;  %v173_v44 = vsel %vm167_vm3, %v170_v35, %v172_v39  ;;  %v381_v40 = vlaneseq }
  0x3a   : > { %v177_v45 = vsel %vm167_vm3, %v174_v37, %v176_v42  ;;  %v181_v46 = vsel %vm167_vm3, %v178_v38, %v180_v43  ;;  %v189_v51 = vmul.u32 %v182_v29, %v173_v44 }
  0x3b   : > { %v749_v47 = vmul.u32.u64.low %v182_v29, %v181_v46  ;;  %v750_v48 = vmul.u32.u64.high %v182_v29, %v181_v46, %v749_v47  ;;  %v752_v49 = vmul.u32.u64.low %v182_v29, %v177_v45  ;;  %v753_v50 = vmul.u32.u64.high %v182_v29, %v177_v45, %v752_v49 }
  0x3c   : > { %v382_v41 = vshrl.u32 %v381_v40, 7  ;;  %v384_v42 = vand.u32 127, %v381_v40 }
  0x3d   : > { %vm191_vm5 = vc.u32 %v750_v48, %v752_v49  ;;  %v192_v52 = vadd.s32 1, %v753_v50  ;;  %v190_v63 = vadd.s32 %v752_v49, %v750_v48 }
  0x3e   : > { %v385_v43 = vmul.u32 128, %v382_v41 }
  0x3f   : > { %v193_v53 = vsel %vm191_vm5, %v192_v52, %v753_v50 }
  0x40   : > { %v194_v54 = vadd.s32 %v193_v53, %v189_v51  ;;  %v782_v44 = vadd.s32 %v385_v43, %v384_v42 }
  0x42   : > { %v195_v55 = vadd.s32 536870912, %v194_v54  ;;  %vm387_vm0 = vcmp.eq.s32.totalorder %v782_v44, 0  ;;  %vm390_vm1 = vcmp.eq.s32.totalorder %v782_v44, 1  ;;  %vm393_vm2 = vcmp.eq.s32.totalorder %v782_v44, 2 }
  0x43   : > { %vm396_vm3 = vcmp.eq.s32.totalorder %v782_v44, 128  ;;  %vm399_vm4 = vcmp.eq.s32.totalorder %v782_v44, 129  ;;  %vm402_vm5 = vcmp.eq.s32.totalorder %v782_v44, 130 }
  0x44   : > { %v196_v56 = vshrl.u32 %v195_v55, 30 }
  0x46   : > { %v197_v57 = vshll.u32 %v196_v56, 30  ;;  %v220_v13 = vsub.s32 4, %v196_v56 }
  0x48   : > { %v198_v58 = vsub.s32 %v194_v54, %v197_v57  ;;  %v221_v16 = vsel %vm136_vm7, %v220_v13, %v196_v56 }
  0x49   : > { %v223_v19 = vsel %vm135_vm8, 0, %v221_v16 }
  0x4a   : > { %v200_v59 = vsub.s32 0, %v198_v58  ;;  %v330_v20 = vadd.s32 3, %v223_v19  ;;  %v227_v22 = vand.u32 3, %v223_v19 }
  0x4c   : > { %v492_v60 = vmin.u32 %v200_v59, %v198_v58  ;;  %v331_v21 = vand.u32 3, %v330_v20  ;;  %vm232_vm10 = vcmp.eq.s32.totalorder %v227_v22, 2  ;;  %vm229_vm12 = vcmp.eq.s32.totalorder %v227_v22, 0 }
  0x4d   : > { %vm228_vm14 = vcmp.lt.s32.totalorder %v227_v22, 2 }
  0x4e   : > { %v202_v61 = vclz %v492_v60  ;;  %vm336_vm9 = vcmp.eq.s32.totalorder %v331_v21, 2  ;;  %vm333_vm11 = vcmp.eq.s32.totalorder %v331_v21, 0  ;;  %vm332_vm13 = vcmp.lt.s32.totalorder %v331_v21, 2 }
  0x50   : > { %v493_v62 = vadd.s32 4294967294, %v202_v61 }
  0x52   : > { %vm494_vm6 = vcmp.lt.s32.totalorder %v493_v62, 0 }
  0x53   : > { %v205_v1 = vsel %vm494_vm6, 0, %v493_v62  ;;  %vm405_vm6 = vcmp.eq.s32.totalorder %v782_v44, 256 }
  0x54   : > { %v206_v2 = vsub.s32 32, %v205_v1  ;;  %v207_v4 = vshll.u32 %v198_v58, %v205_v1  ;;  %v210_v5 = vsub.s32 4294967266, %v205_v1 }
  0x56   : > { %v208_v6 = vshrl.u32 %v190_v63, %v206_v2  ;;  %v211_v7 = vadd.s32 127, %v210_v5 }
  0x58   : > { %v209_v8 = vor.u32 %v208_v6, %v207_v4  ;;  %v212_v9 = vshll.u32 %v211_v7, 23 }
  0x5a   : > { %v213_v10 = vor.u32 4788187, %v212_v9  ;;  %v216_v11 = vcvt.s32.f32 %v209_v8 }
  0x5c   : > { %v214_v12 = vand.u32 2147483647, %v213_v10 }
  0x5e   : > { %v217_v14 = vmul.f32 %v216_v11, %v214_v12 }
  0x60   : > { %v218_v15 = vxor.u32 2147483648, %v217_v14 }
  0x62   : > { %v219_v17 = vsel %vm136_vm7, %v218_v15, %v217_v14  ;;  %vm408_vm7 = vcmp.eq.s32.totalorder %v782_v44, 257 }
  0x63   : > { %v222_v18 = vsel %vm135_vm8, %v743_v0, %v219_v17  ;;  %v133_v0 = vld [vmem:[%s132_s8] sm:$0x1]  ;;  %vm411_vm8 = vcmp.eq.s32.totalorder %v782_v44, 258 }
  0x64   : > { %573 = vcosq.f32 %v222_v18 }
  0x65   : > { %575 = vsinq.f32 %v222_v18 }
  0x6e   : > { %v574_v23 = vpop.eup %573 }
  0x6f   : > { %v576_v24 = vpop.eup %575  ;;  %v233_v25 = vxor.u32 2147483648, %v574_v23 }
  0x70   : > { %v230_v26 = vxor.u32 2147483648, %v576_v24 }
  0x71   : > { %v338_v3 = vsel %vm336_vm9, %v233_v25, %v576_v24  ;;  %v234_v27 = vsel %vm232_vm10, %v233_v25, %v576_v24  ;;  %vm414_vm9 = vcmp.eq.s32.totalorder %v782_v44, 384  ;;  %vm417_vm10 = vcmp.eq.s32.totalorder %v782_v44, 385 }
  0x72   : > { %v335_v28 = vsel %vm333_vm11, %v574_v23, %v230_v26  ;;  %v231_v29 = vsel %vm229_vm12, %v574_v23, %v230_v26  ;;  %vm420_vm11 = vcmp.eq.s32.totalorder %v782_v44, 386 }
  0x73   : > { %v339_v30 = vsel %vm332_vm13, %v335_v28, %v338_v3  ;;  %v235_v31 = vsel %vm228_vm14, %v231_v29, %v234_v27 }
  0x74   : > { %v340_v32 = vsel %vm226_vm15, nan, %v339_v30  ;;  %v236_v33 = vsel %vm226_vm15, nan, %v235_v31 }
  0x75   : > { %349 = vrot.lane.b32.xlu1 %v340_v32, %s662_s5  ;;  %342 = vrot.lane.b32.xlu0 %v236_v33, %s662_s5  ;;  %507 = vpush %v236_v33 }
  0x79   : > { %352 = vrot.lane.b32.xlu1 %v340_v32, %s663_s9  ;;  %345 = vrot.lane.b32.xlu0 %v236_v33, %s663_s9 }
  0x7d   : > { %375 = vrot.lane.b32.xlu0 %v133_v0, %s662_s5  ;;  %378 = vrot.lane.b32.xlu1 %v133_v0, %s663_s9 }
  0xa6   : > { %s768_s10 = spop %507 }
  0xe7   : > { %v350_v34 = vpop.permute.xlu1 %349  ;;  %v343_v35 = vpop.permute.xlu0 %342 }
  0xe8   : > { %509 = vpush %v343_v35 }
  0xeb   : > { %v353_v36 = vpop.permute.xlu1 %352  ;;  %v346_v37 = vpop.permute.xlu0 %345 }
  0xec   : > { %511 = vpush %v346_v37 }
  0xed   : > { %513 = vpush %v340_v32 }
  0xee   : > { %515 = vpush %v350_v34 }
  0xef   : > { %517 = vpush %v353_v36  ;;  %v376_v38 = vpop.permute.xlu0 %375  ;;  %v379_v39 = vpop.permute.xlu1 %378 }
  0xf0   : > { %519 = vpush %v133_v0 }
  0xf1   : > { %521 = vpush %v376_v38 }
  0xf2   : > { %523 = vpush %v379_v39 }
 0x119   : > { %s770_s11 = spop %509 }
 0x11a   : > { %s373_s1 = smul.f32 %s770_s11, %s768_s10 }
 0x11c   : > { %v412_v61 = vstv %s373_s1  ;;  %s425_s1 = scalar_lea.sflag [#allocation5], %s126_s6 }
 0x11d   : > { %s772_s12 = spop %511 }
 0x11e   : > { %s774_s13 = spop %513  ;;  %s355_s15 = smul.f32 %s772_s12, %s770_s11 }
 0x11f   : > { %s776_s14 = spop %515  ;;  %s366_s16 = smul.f32 %s772_s12, %s768_s10 }
 0x120   : > { %s518_s21 = spop %517  ;;  %s356_s23 = smul.f32 %s776_s14, %s772_s12  ;;  %v388_v45 = vstv %s355_s15 }
 0x121   : > { %s358_s24 = smul.f32 %s518_s21, %s768_s10  ;;  %v389_v46 = vsel %vm387_vm0, %v388_v45, 0.0 }
 0x122   : > { %s357_s28 = smul.f32 %s774_s13, %s356_s23 }
 0x123   : > { %s360_s29 = smul.f32 %s768_s10, %s356_s23  ;;  %s802_s23 = sshll.u32 %s126_s6, 3 }
 0x124   : > { %s359_s30 = ssub.f32 %s357_s28, %s358_s24  ;;  %s361_s4 = smul.f32 %s518_s21, %s774_s13 }
 0x125   : > { %s363_s5 = smul.f32 %s518_s21, %s770_s11  ;;  %s371_s24 = ssub.f32 0.0, %s776_s14 }
 0x126   : > { %s362_s7 = sadd.f32 %s361_s4, %s360_s29  ;;  %s364_s8 = smul.f32 %s518_s21, %s776_s14  ;;  %v391_v47 = vstv %s359_s30 }
 0x127   : > { %s369_s9 = smul.f32 %s774_s13, %s772_s12  ;;  %v392_v48 = vsel %vm390_vm1, %v391_v47, %v389_v46  ;;  %v397_v51 = vstv %s363_s5  ;;  %s520_s29 = spop %519  ;;  %v406_v56 = vstv %s371_s24 }
 0x128   : > { %s365_s15 = smul.f32 %s774_s13, %s364_s8  ;;  %v394_v49 = vstv %s362_s7  ;;  %s522_s7 = spop %521  ;;  %v415_v60 = vstv %s520_s29 }
 0x129   : > { %s368_s28 = smul.f32 %s768_s10, %s364_s8  ;;  %v395_v50 = vsel %vm393_vm2, %v394_v49, %v392_v48  ;;  %s524_s12 = spop %523  ;;  %v418_v63 = vstv %s522_s7 }
 0x12a   : > { %s367_s21 = sadd.f32 %s366_s16, %s365_s15  ;;  %v398_v52 = vsel %vm396_vm3, %v397_v51, %v395_v50  ;;  %s372_s30 = smul.f32 %s774_s13, %s770_s11  ;;  %v421_v2 = vstv %s524_s12 }
 0x12b   : > { %s370_s4 = ssub.f32 %s368_s28, %s369_s9  ;;  %s500_s10 = sshll.u32 %s709_s20, 7 }
 0x12c   : > { %v400_v53 = vstv %s367_s21  ;;  %v409_v58 = vstv %s372_s30  ;;  %s128_s11 = scalar_lea.vmem [#allocation4], %s802_s23  ;;  %s826_s5 = scalar_lea.hbm %s873_s3, %s500_s10 }
 0x12d   : > { %v401_v54 = vsel %vm399_vm4, %v400_v53, %v398_v52  ;;  %v403_v55 = vstv %s370_s4  ;;  %s438_s13 = sshll.u32 %s128_s11, 4  ;;  %s664_s8 = smov [#allocation4]   ;;  %s828_s13 = int_to_ptr.vmem [resolvable:$true] %s438_s13 }
 0x12e   : > { %v404_v57 = vsel %vm402_vm5, %v403_v55, %v401_v54  ;;  %s589_s20 = scalar_lea.vmem %s828_s13, 128  ;;  %s593_s9 = sshll.u32 %s664_s8, 4  ;;  %s594_s9 = int_to_ptr.vmem [resolvable:$false] %s593_s9 }
 0x12f   : > { %v407_v59 = vsel %vm405_vm6, %v406_v56, %v404_v57  ;;  %p590_p1 = scmp.ne.s32.totalorder %s828_s13, %s589_s20  ;;  %s595_s15 = scalar_lea.vmem %s594_s9, 256 }
 0x130   : > { %v410_v62 = vsel %vm408_vm7, %v409_v58, %v407_v59  ;;  %p596_p4 = scmp.lt.s32.totalorder %s828_s13, %s594_s9  ;;  %p597_p5 = scmp.lt.s32.totalorder %s595_s15, %s589_s20 }
 0x131   : > { %v413_v1 = vsel %vm411_vm8, %v412_v61, %v410_v62  ;;  %p591_p2 = pnand %p590_p1, %p726_p10 }
 0x132   : > { %v416_v4 = vsel %vm414_vm9, %v415_v60, %v413_v1  ;;  %p598_p6 = por %p597_p5, %p596_p4 }
 0x133   : > { %v419_v5 = vsel %vm417_vm10, %v418_v63, %v416_v4  ;;  %p592_p3 = pneg %p591_p2 }
 0x134   : > { %v422_v6 = vsel %vm420_vm11, %v421_v2, %v419_v5 }
 0x135   : > { %423 = vst [vmem:[%s128_s11] sm:$0xff] %v422_v6  ;;  %p599_p7 = pnand %p598_p6, %p592_p3 }
 0x137   : > { %602 = shalt.err (!%p599_p7)
}
 0x138   : > { %s603_s6 = scalar_lea.hbm %s826_s5, 128  ;;  %s607_s28 = scalar_lea.hbm %s873_s3, 512 }
 0x139   : > { %p604_p8 = scmp.ne.s32.totalorder %s826_s5, %s603_s6  ;;  %p608_p13 = scmp.lt.u32.totalorder %s826_s5, %s873_s3 }
 0x13a   : > { %p609_p0 = scmp.lt.u32.totalorder %s607_s28, %s603_s6  ;;  %p611_p2 = scmp.lt.u32.totalorder %s603_s6, %s826_s5 }
 0x13b   : > { %p605_p9 = pnand %p604_p8, %p726_p10 }
 0x13c   : > { %p610_p1 = por %p609_p0, %p608_p13 }
 0x13d   : > { %p606_p12 = pneg %p605_p9 }
 0x13e   : > { %p612_p3 = por %p611_p2, %p610_p1 }
 0x140   : > { %p613_p4 = pnand %p612_p3, %p606_p12 }
 0x142   : > { %616 = shalt.err (!%p613_p4)
}
 0x143   : > { %525 = dma.vmem_to_hbm [thread:$0]  (%p726_p10), %s828_s13, 128, %s826_s5, %s425_s1  }
 0x144 PF: > { %p531_p5 = scmp.ge.s32.totalorder %s653_s19, 2  ;;  %s450_s30 = sand.u32 1, %s641_s17  }
 0x145   : > { %s451_s4 = scalar_lea.sflag [#allocation5], %s450_s30 }
 0x146   : > { %p528_p6 = pnand %p531_p5, %p730_p11 }
 0x148   : > { %636 = dma.done.wait (!%p528_p6), %s451_s4, 128  }
 0x149   : > { %638 = vsyncadd (!%p528_p6), %s451_s4, 4294967168  ;;  %p19_p7 = scmp.ge.s32.totalorder %s713_s22, 6   ;;  %s878_s17 = smov %s645_s18 }
 0x14a   : > { %s879_s18 = smov %s649_s0  ;;  %s880_s0 = smov %s724_s25 }
 0x14b   : > { %s881_s19 = smov %s713_s22  ;;  %21 = sbr.rel (!%p19_p7) target bundleno = 18 (0x12), region = 62 }
 0x152   :  { %456 = vsyncpa [#allocation5], 1 }
 0x153   :  { %458 = vsyncpa [#allocation5 + $0x1], 1 }

</bundles_post_ra>
